<compile_context>
chip_gen: v5e
topology: v5e:2x2
jax: 0.10.0
libtpu: 0.0.40
codegen_flags: <defaults>
</compile_context>

<pallas_src>
import functools

import jax
import jax.numpy as jnp
import numpy as np
from jax.experimental import pallas as pl
from jax.experimental.pallas import tpu as pltpu

BN_EPS = 1e-5


# ------------------------- Pallas kernels -------------------------

def _upconv_tanh_kernel(x_ref, w_ref, b_ref, o_ref):
    # One M-tile of ConvTranspose3d(k=2, s=2): (tm, Cin) @ (Cin, 8*Cout) + bias, tanh.
    y = jnp.dot(x_ref[...], w_ref[...], preferred_element_type=jnp.float32)
    o_ref[...] = jnp.tanh(y + b_ref[...])


def _conv_stats_kernel(*refs, k, H, W):
    """One (n, d) step of Conv3d 'same' (stride 1).

    refs[:k]        -- k halo depth slices of the padded input, each (H+2p, W+2p, Cin)
    refs[k]         -- weight matrix (k^3*Cin, Cout), tap-major (kd, kh, kw, cin)
    refs[k+1]       -- conv bias (1, Cout)
    refs[k+2]       -- y output block (H*W, Cout), pre-BatchNorm activation
    refs[k+3:k+5]   -- per-sample per-channel sum / sum-of-squares accumulators (1, Cout)
    """
    x_refs = refs[:k]
    w_ref, b_ref, y_ref, ssum_ref, ssq_ref = refs[k:]
    d = pl.program_id(1)

    # Build the k^3 shifted views in VMEM and fold them into one wide contraction.
    cols = []
    for kd in range(k):
        xk = x_refs[kd][...]                          # (H+2p, W+2p, Cin)
        for kh in range(k):
            for kw in range(k):
                v = xk[kh:kh + H, kw:kw + W, :]       # (H, W, Cin)
                cols.append(v.reshape(H * W, v.shape[-1]))
    patches = jnp.concatenate(cols, axis=-1)          # (H*W, k^3*Cin)

    y = jnp.dot(patches, w_ref[...],
                preferred_element_type=jnp.float32) + b_ref[...]
    y_ref[...] = y

    # Global-BN statistics: accumulate sum / sumsq over the depth sweep (axis 1,
    # "arbitrary"); the stats block is resident across d and indexed per sample n.
    @pl.when(d == 0)
    def _():
        ssum_ref[...] = jnp.zeros_like(ssum_ref)
        ssq_ref[...] = jnp.zeros_like(ssq_ref)

    ssum_ref[...] += jnp.sum(y, axis=0, keepdims=True)
    ssq_ref[...] += jnp.sum(y * y, axis=0, keepdims=True)


def _bn_tanh_kernel(y_ref, scale_ref, shift_ref, o_ref):
    # Lane-dense (TR, 128) tile: fused BatchNorm affine + tanh.
    o_ref[...] = jnp.tanh(y_ref[...] * scale_ref[...] + shift_ref[...])


# ------------------------- wrappers (glue) -------------------------

def upconv2x_tanh(x, w, b, tm=1024):
    """ConvTranspose3d(kernel=2, stride=2) + bias + tanh.
    x: (N, D, H, W, Cin); w: (Cin, Cout, 2, 2, 2) [torch layout]; b: (Cout,)."""
    N, D, H, W, Cin = x.shape
    Cout = w.shape[1]
    # columns ordered as (kd, kh, kw, co)
    w2 = jnp.transpose(w, (0, 2, 3, 4, 1)).reshape(Cin, 8 * Cout)
    b2 = jnp.tile(b, 8).reshape(1, 8 * Cout)

    M0 = N * D * H * W
    xf = x.reshape(M0, Cin)
    tm = min(tm, M0)
    grid = (pl.cdiv(M0, tm),)

    yf = pl.pallas_call(
        _upconv_tanh_kernel,
        out_shape=jax.ShapeDtypeStruct((M0, 8 * Cout), jnp.float32),
        grid_spec=pltpu.PrefetchScalarGridSpec(
            num_scalar_prefetch=0, grid=grid,
            in_specs=[
                pl.BlockSpec((tm, Cin), lambda i: (i, 0)),
                pl.BlockSpec((Cin, 8 * Cout), lambda i: (0, 0)),
                pl.BlockSpec((1, 8 * Cout), lambda i: (0, 0)),
            ],
            out_specs=pl.BlockSpec((tm, 8 * Cout), lambda i: (i, 0))),
        compiler_params=pltpu.CompilerParams(dimension_semantics=("parallel",)),
    )(xf, w2, b2)

    # TODO(synk): 2x2x2 interleave still done as XLA glue (one transpose round trip).
    y = yf.reshape(N, D, H, W, 2, 2, 2, Cout)
    y = jnp.transpose(y, (0, 1, 4, 2, 5, 3, 6, 7))
    return y.reshape(N, 2 * D, 2 * H, 2 * W, Cout)


def _bn_tanh_lane_dense(y2, scale128, shift128, tr=1024):
    R = y2.shape[0]
    tr = min(tr, R)
    return pl.pallas_call(
        _bn_tanh_kernel,
        out_shape=jax.ShapeDtypeStruct((R, 128), jnp.float32),
        grid_spec=pltpu.PrefetchScalarGridSpec(
            num_scalar_prefetch=0, grid=(pl.cdiv(R, tr),),
            in_specs=[
                pl.BlockSpec((tr, 128), lambda r: (r, 0)),
                pl.BlockSpec((1, 128), lambda r: (0, 0)),
                pl.BlockSpec((1, 128), lambda r: (0, 0)),
            ],
            out_specs=pl.BlockSpec((tr, 128), lambda r: (r, 0))),
        compiler_params=pltpu.CompilerParams(dimension_semantics=("parallel",)),
    )(y2, scale128, shift128)


def conv3d_same_bn_tanh(x, w_taps, b, gamma, beta, k):
    """Conv3d(k, stride=1, 'same') + train-mode BatchNorm3d (batch stats) + tanh.
    x: (N,D,H,W,Cin); w_taps: (k^3, Cin, Cout), taps flattened row-major (kd,kh,kw)."""
    N, D, H, W, Cin = x.shape
    T, Cin2, Cout = w_taps.shape
    assert T == k ** 3 and Cin2 == Cin
    pad = (k - 1) // 2
    # TODO(synk): 'same' zero-pad kept as XLA glue rather than in-kernel masking.
    xp = jnp.pad(x, ((0, 0), (pad, pad), (pad, pad), (pad, pad), (0, 0)))

    HW = H * W
    Kdim = k ** 3 * Cin
    wmat = w_taps.reshape(Kdim, Cout)        # (kd,kh,kw,cin)-major, matches patch columns
    b2 = b.reshape(1, Cout)

    # k views into the SAME padded array, offset by kd along depth (halo reads, no copy).
    in_specs = [
        pl.BlockSpec((None, None, H + 2 * pad, W + 2 * pad, Cin),
                     lambda n, d, j=j: (n, d + j, 0, 0, 0))
        for j in range(k)
    ]
    in_specs += [
        pl.BlockSpec((Kdim, Cout), lambda n, d: (0, 0)),
        pl.BlockSpec((1, Cout), lambda n, d: (0, 0)),
    ]
    out_shapes = (
        jax.ShapeDtypeStruct((N, D, HW, Cout), jnp.float32),   # pre-BN activation
        jax.ShapeDtypeStruct((N, 1, Cout), jnp.float32),       # per-sample channel sum
        jax.ShapeDtypeStruct((N, 1, Cout), jnp.float32),       # per-sample channel sumsq
    )
    out_specs = (
        pl.BlockSpec((None, None, HW, Cout), lambda n, d: (n, d, 0, 0)),
        pl.BlockSpec((None, 1, Cout), lambda n, d: (n, 0, 0)),
        pl.BlockSpec((None, 1, Cout), lambda n, d: (n, 0, 0)),
    )

    y, ssum, ssq = pl.pallas_call(
        functools.partial(_conv_stats_kernel, k=k, H=H, W=W),
        out_shape=out_shapes,
        grid_spec=pltpu.PrefetchScalarGridSpec(
            num_scalar_prefetch=0, grid=(N, D),
            in_specs=in_specs, out_specs=out_specs),
        compiler_params=pltpu.CompilerParams(
            dimension_semantics=("parallel", "arbitrary")),
    )(*([xp] * k), wmat, b2)

    # O(Cout) scalar math for the global BatchNorm statistics (biased variance).
    M = N * D * HW
    s = jnp.sum(ssum, axis=(0, 1))
    sq = jnp.sum(ssq, axis=(0, 1))
    mean = s / M
    var = sq / M - mean * mean
    inv = jax.lax.rsqrt(var + BN_EPS)
    scale = gamma * inv
    shift = beta - mean * scale

    # Lane-dense normalize + tanh pass: same row-major bytes viewed as (R, 128);
    # lane l holds channel l % Cout.
    assert 128 % Cout == 0  # TODO(synk): Cout not dividing 128 needs per-row patterns
    rep = 128 // Cout
    scale128 = jnp.tile(scale, rep).reshape(1, 128)
    shift128 = jnp.tile(shift, rep).reshape(1, 128)

    flat = y.reshape(-1)
    total = flat.shape[0]
    rpad = -(-total // 128) * 128
    if rpad != total:
        flat = jnp.pad(flat, (0, rpad - total))
    y2 = flat.reshape(rpad // 128, 128)
    o2 = _bn_tanh_lane_dense(y2, scale128, shift128)
    out = o2.reshape(-1)[:total].reshape(N, D, H, W, Cout)
    return out


def decoderblock_forward(x_ncdhw, params, k, residual_ncdhw=None):
    # layout: input/output NCDHW (like the PyTorch module); internal NDHWC.
    x = jnp.transpose(x_ncdhw, (0, 2, 3, 4, 1)).astype(jnp.float32)
    out = upconv2x_tanh(x, params["up_w"], params["up_b"])           # upconv + tanh
    if residual_ncdhw is not None:
        res = jnp.transpose(residual_ncdhw, (0, 2, 3, 4, 1)).astype(jnp.float32)
        out = jnp.concatenate([out, res], axis=-1)                   # torch.cat(dim=1)
    out = conv3d_same_bn_tanh(out, params["w1"], params["b1"],
                              params["gamma"], params["beta"], k)    # conv1 + bn + tanh
    out = conv3d_same_bn_tanh(out, params["w2"], params["b2"],
                              params["gamma"], params["beta"], k)    # conv2 + (same) bn + tanh
    return jnp.transpose(out, (0, 4, 1, 2, 3))


# ------------------------- pure-JAX reference -------------------------

def _ref_forward(x_ncdhw, params, k):
    x = jnp.transpose(x_ncdhw, (0, 2, 3, 4, 1)).astype(jnp.float32)
    N, D, H, W, _ = x.shape
    Co = params["up_w"].shape[1]
    up = jnp.einsum("ndhwi,iopqr->ndphqwro", x, params["up_w"])
    up = up.reshape(N, 2 * D, 2 * H, 2 * W, Co) + params["up_b"]
    up = jnp.tanh(up)

    def conv_bn_tanh(z, w_taps, b, gamma, beta):
        T, Cin, Cout = w_taps.shape
        w5 = w_taps.reshape(k, k, k, Cin, Cout)                      # DHWIO
        y = jax.lax.conv_general_dilated(
            z, w5, window_strides=(1, 1, 1), padding="SAME",
            dimension_numbers=("NDHWC", "DHWIO", "NDHWC")) + b
        mean = jnp.mean(y, axis=(0, 1, 2, 3), keepdims=True)
        var = jnp.mean((y - mean) ** 2, axis=(0, 1, 2, 3), keepdims=True)
        return jnp.tanh((y - mean) / jnp.sqrt(var + BN_EPS) * gamma + beta)

    out = conv_bn_tanh(up, params["w1"], params["b1"], params["gamma"], params["beta"])
    out = conv_bn_tanh(out, params["w2"], params["b2"], params["gamma"], params["beta"])
    return jnp.transpose(out, (0, 4, 1, 2, 3))


# ------------------------- main -------------------------

if __name__ == "__main__":
    in_channels = 8
    k = 3                                 # Conv kernel size (constructor arg)
    up_out = in_channels                  # non-bottleneck ConvTranspose3d: Cin -> Cin
    out_channels = in_channels // 2       # = 4
    N, D, H, W = 2, 4, 4, 4               # small NCDHW input; output spatial doubles

    key = jax.random.PRNGKey(0)
    ks = jax.random.split(key, 9)
    params = {
        # ConvTranspose3d weight in torch layout (Cin, Cout, 2, 2, 2)
        "up_w": 0.2 * jax.random.normal(ks[0], (in_channels, up_out, 2, 2, 2), jnp.float32),
        "up_b": 0.1 * jax.random.normal(ks[1], (up_out,), jnp.float32),
        # Conv3d weights stored per-tap: (k^3, Cin, Cout), taps flattened (kd,kh,kw)
        "w1": 0.2 * jax.random.normal(ks[2], (k ** 3, in_channels, out_channels), jnp.float32),
        "b1": 0.1 * jax.random.normal(ks[3], (out_channels,), jnp.float32),
        "w2": 0.2 * jax.random.normal(ks[4], (k ** 3, out_channels, out_channels), jnp.float32),
        "b2": 0.1 * jax.random.normal(ks[5], (out_channels,), jnp.float32),
        # shared BatchNorm3d affine params (same self.bn used after conv1 and conv2)
        "gamma": 1.0 + 0.1 * jax.random.normal(ks[6], (out_channels,), jnp.float32),
        "beta": 0.1 * jax.random.normal(ks[7], (out_channels,), jnp.float32),
    }
    x = jax.random.normal(ks[8], (N, in_channels, D, H, W), jnp.float32)

    out = jax.block_until_ready(decoderblock_forward(x, params, k))
    assert out.shape == (N, out_channels, 2 * D, 2 * H, 2 * W), out.shape

    ref = jax.block_until_ready(_ref_forward(x, params, k))
    np.testing.assert_allclose(np.asarray(out), np.asarray(ref), rtol=2e-2, atol=2e-2)

    print("KERNEL_OK")
</pallas_src>

<mosaic_0001>
module attributes {stable_mosaic.version = 11 : i64} {
  func.func @_upconv_tanh_kernel(%arg0: i32, %arg1: memref<128x8xf32, #tpu.memory_space<vmem>>, %arg2: memref<8x64xf32, #tpu.memory_space<vmem>>, %arg3: memref<1x64xf32, #tpu.memory_space<vmem>>, %arg4: memref<128x64xf32, #tpu.memory_space<vmem>>) attributes {dimension_semantics = [#tpu.dimension_semantics<parallel>], iteration_bounds = array<i64: 1>, scalar_prefetch = 0 : i64, scratch_operands = 0 : i64, tpu.core_type = #tpu.core_type<tc>, window_params = [{transform_indices = @transform_0, window_bounds = array<i64: 128, 8>}, {pipeline_mode = #tpu.pipeline_mode<synchronous>, transform_indices = @transform_1, window_bounds = array<i64: 8, 64>}, {pipeline_mode = #tpu.pipeline_mode<synchronous>, transform_indices = @transform_2, window_bounds = array<i64: 1, 64>}, {transform_indices = @transform_3, window_bounds = array<i64: 128, 64>}]} {
    %c0 = arith.constant 0 : index
    %c0_0 = arith.constant 0 : index
    %0 = vector.load %arg1[%c0, %c0_0] : memref<128x8xf32, #tpu.memory_space<vmem>>, vector<128x8xf32>
    %c0_1 = arith.constant 0 : index
    %c0_2 = arith.constant 0 : index
    %1 = vector.load %arg2[%c0_1, %c0_2] : memref<8x64xf32, #tpu.memory_space<vmem>>, vector<8x64xf32>
    %cst = arith.constant dense<0.000000e+00> : vector<128x64xf32>
    %2 = tpu.matmul %0, %1, %cst {dimension_numbers = #tpu.dot_dimension_numbers<[1], [0], [0], [1], [0, 0, 1, 1], [], []>} : vector<128x8xf32>, vector<8x64xf32>, vector<128x64xf32> -> vector<128x64xf32>
    %c0_3 = arith.constant 0 : index
    %c0_4 = arith.constant 0 : index
    %3 = vector.load %arg3[%c0_3, %c0_4] : memref<1x64xf32, #tpu.memory_space<vmem>>, vector<1x64xf32>
    %4 = vector.broadcast %3 : vector<1x64xf32> to vector<128x64xf32>
    %5 = arith.addf %2, %4 : vector<128x64xf32>
    %6 = math.tanh %5 : vector<128x64xf32>
    %c0_5 = arith.constant 0 : index
    %c0_6 = arith.constant 0 : index
    %7 = vector.load %arg4[%c0_5, %c0_6] : memref<128x64xf32, #tpu.memory_space<vmem>>, vector<128x64xf32>
    tpu.vector_store %arg4[%c0_5, %c0_6], %6 {strides = array<i32>} : memref<128x64xf32, #tpu.memory_space<vmem>>, vector<128x64xf32>,
    return
  }
  func.func @transform_0(%arg0: i32) -> (i32, i32) {
    %c0_i32 = arith.constant 0 : i32
    %c0_i32_0 = arith.constant 0 : i32
    return %arg0, %c0_i32 : i32, i32
  }
  func.func @transform_1(%arg0: i32) -> (i32, i32) {
    %c0_i32 = arith.constant 0 : i32
    %c0_i32_0 = arith.constant 0 : i32
    %c0_i32_1 = arith.constant 0 : i32
    return %c0_i32, %c0_i32_0 : i32, i32
  }
  func.func @transform_2(%arg0: i32) -> (i32, i32) {
    %c0_i32 = arith.constant 0 : i32
    %c0_i32_0 = arith.constant 0 : i32
    %c0_i32_1 = arith.constant 0 : i32
    return %c0_i32, %c0_i32_0 : i32, i32
  }
  func.func @transform_3(%arg0: i32) -> (i32, i32) {
    %c0_i32 = arith.constant 0 : i32
    %c0_i32_0 = arith.constant 0 : i32
    return %arg0, %c0_i32 : i32, i32
  }
}

</mosaic_0001>

<bundles_post_ra>
// kernel: tpu_custom_call.1
= control target key start
LH: loop header
LB: loop body
LE: loop exit
PB: predicated region body
PF: predicated region fallthrough
CT: control target
= control target key end

     0   :  { %vm35_vm0 = vcmask 64512   ;;  %vm165_vm1 = vcmask 523264   ;;  %s410_s1 = inlined_call_operand.vmem [shape: f32[8,64], index: 1, kind: input, shape index: {}]   ;;  %s411_s0 = inlined_call_operand.vmem [shape: f32[128,8], index: 0, kind: input, shape index: {}]   ;;  %s412_s2 = inlined_call_operand.vmem [shape: f32[1,64], index: 2, kind: input, shape index: {}]   ;;  %s413_s3 = inlined_call_operand.vmem [shape: f32[128,64], index: 3, kind: output, shape index: {}]  }
   0x1   :  { %v30_v0 = vld [vmem:[%s410_s1] sm:$0xff]  ;;  %v23_v5 = vld [vmem:[%s411_s0 + $0x48] sm:$0xff]  ;;  %v24_v9 = vld [vmem:[%s411_s0 + $0x50] sm:$0xff] }
   0x2   :  { %v22_v1 = vld [vmem:[%s411_s0 + $0x40] sm:$0xff]  ;;  %203 = vmatpush.msra.mxu2 %v30_v0  ;;  %204 = vmatpush.msra.mxu3 %v30_v0  ;;  %v27_v6 = vld [vmem:[%s411_s0 + $0x68] sm:$0xff]  ;;  %v28_v10 = vld [vmem:[%s411_s0 + $0x70] sm:$0xff] }
   0x3   :  { %v26_v2 = vld [vmem:[%s411_s0 + $0x60] sm:$0xff]  ;;  %194 = vmatmul.msk.f32.vlgmr.msra.gmra.mxu2 %vm35_vm0, %v22_v1  ;;  %99 = vmatpush.msra.mxu0 %v30_v0  ;;  %v15_v7 = vld [vmem:[%s411_s0 + $0x8] sm:$0xff]  ;;  %v16_v11 = vld [vmem:[%s411_s0 + $0x10] sm:$0xff] }
   0x4   :  { %v14_v3 = vld [vmem:[%s411_s0] sm:$0xff]  ;;  %198 = vmatmul.msk.f32.vlgmr.msra.gmra.mxu3 %vm35_vm0, %v26_v2  ;;  %202 = vmatpush.msra.mxu1 %v30_v0  ;;  %v19_v8 = vld [vmem:[%s411_s0 + $0x28] sm:$0xff]  ;;  %v20_v12 = vld [vmem:[%s411_s0 + $0x30] sm:$0xff] }
   0x5   :  { %v18_v4 = vld [vmem:[%s411_s0 + $0x20] sm:$0xff]  ;;  %186 = vmatmul.msk.f32.vlgmr.msra.gmra.mxu0 %vm35_vm0, %v14_v3  ;;  %v25_v13 = vld [vmem:[%s411_s0 + $0x58] sm:$0xff] }
   0x6   :  { %190 = vmatmul.msk.f32.vlgmr.msra.gmra.mxu1 %vm35_vm0, %v18_v4  ;;  %v29_v14 = vld [vmem:[%s411_s0 + $0x78] sm:$0xff]  ;;  %v328_v17 = vld [vmem:[%s412_s2] ss:$0 sm:$0xff] }
   0x7   :  { %v17_v15 = vld [vmem:[%s411_s0 + $0x18] sm:$0xff] }
   0x8   :  { %v21_v16 = vld [vmem:[%s411_s0 + $0x38] sm:$0xff] }
   0xb   :  { %195 = vmatmul.msk.f32.gmra.mxu2 %vm35_vm0, %v23_v5 }
   0xc   :  { %199 = vmatmul.msk.f32.gmra.mxu3 %vm35_vm0, %v27_v6 }
   0xd   :  { %187 = vmatmul.msk.f32.gmra.mxu0 %vm35_vm0, %v15_v7 }
   0xe   :  { %191 = vmatmul.msk.f32.gmra.mxu1 %vm35_vm0, %v19_v8 }
  0x13   :  { %196 = vmatmul.msk.f32.gmra.mxu2 %vm35_vm0, %v24_v9 }
  0x14   :  { %200 = vmatmul.msk.f32.gmra.mxu3 %vm35_vm0, %v28_v10 }
  0x15   :  { %188 = vmatmul.msk.f32.gmra.mxu0 %vm35_vm0, %v16_v11 }
  0x16   :  { %192 = vmatmul.msk.f32.gmra.mxu1 %vm35_vm0, %v20_v12 }
  0x1b   :  { %197 = vmatmul.msk.f32.gmra.mxu2 %vm35_vm0, %v25_v13 }
  0x1c   :  { %201 = vmatmul.msk.f32.gmra.mxu3 %vm35_vm0, %v29_v14 }
  0x1d   :  { %189 = vmatmul.msk.f32.gmra.mxu0 %vm35_vm0, %v17_v15 }
  0x1e   :  { %193 = vmatmul.msk.f32.gmra.mxu1 %vm35_vm0, %v21_v16 }
  0x82   :  { %v101_v18 = vpop.f32.mrf.mxu0 }
  0x83   :  { %v113_v19 = vpop.f32.mrf.mxu1  ;;  %v102_v20 = vadd.f32 %v328_v17, %v101_v18 }
  0x84   :  { %v114_v21 = vadd.f32 %v328_v17, %v113_v19 }
  0x85   :  { %206 = vtanh.f32 %v102_v20 }
  0x86   :  { %208 = vtanh.f32 %v114_v21  ;;  %v125_v22 = vpop.f32.mrf.mxu2 }
  0x87   :  { %v137_v23 = vpop.f32.mrf.mxu3  ;;  %v126_v24 = vadd.f32 %v328_v17, %v125_v22 }
  0x88   :  { %v138_v25 = vadd.f32 %v328_v17, %v137_v23 }
  0x89   :  { %210 = vtanh.f32 %v126_v24 }
  0x8a   :  { %212 = vtanh.f32 %v138_v25  ;;  %v104_v26 = vpop.f32.mrf.mxu0 }
  0x8b   :  { %v116_v27 = vpop.f32.mrf.mxu1  ;;  %v207_v28 = vpop.eup %206  ;;  %v105_v29 = vadd.f32 %v328_v17, %v104_v26 }
  0x8c   :  { %v117_v30 = vadd.f32 %v328_v17, %v116_v27  ;;  %v209_v31 = vpop.eup %208  ;;  %166 = vst.msk [vmem:[%s413_s3] sm:$0xff] %vm165_vm1, %v207_v28 }
  0x8d   :  { %170 = vst.msk [vmem:[%s413_s3 + $0x20] sm:$0xff] %vm165_vm1, %v209_v31  ;;  %214 = vtanh.f32 %v105_v29 }
  0x8e   :  { %216 = vtanh.f32 %v117_v30  ;;  %v128_v32 = vpop.f32.mrf.mxu2 }
  0x8f   :  { %v140_v33 = vpop.f32.mrf.mxu3  ;;  %v211_v34 = vpop.eup %210  ;;  %v129_v35 = vadd.f32 %v328_v17, %v128_v32 }
  0x90   :  { %v141_v36 = vadd.f32 %v328_v17, %v140_v33  ;;  %v213_v37 = vpop.eup %212  ;;  %174 = vst.msk [vmem:[%s413_s3 + $0x40] sm:$0xff] %vm165_vm1, %v211_v34 }
  0x91   :  { %178 = vst.msk [vmem:[%s413_s3 + $0x60] sm:$0xff] %vm165_vm1, %v213_v37  ;;  %218 = vtanh.f32 %v129_v35 }
  0x92   :  { %220 = vtanh.f32 %v141_v36  ;;  %v107_v38 = vpop.f32.mrf.mxu0 }
  0x93   :  { %v119_v39 = vpop.f32.mrf.mxu1  ;;  %v215_v40 = vpop.eup %214  ;;  %v108_v41 = vadd.f32 %v328_v17, %v107_v38 }
  0x94   :  { %v120_v42 = vadd.f32 %v328_v17, %v119_v39  ;;  %v217_v43 = vpop.eup %216  ;;  %167 = vst.msk [vmem:[%s413_s3 + $0x8] sm:$0xff] %vm165_vm1, %v215_v40 }
  0x95   :  { %171 = vst.msk [vmem:[%s413_s3 + $0x28] sm:$0xff] %vm165_vm1, %v217_v43  ;;  %222 = vtanh.f32 %v108_v41 }
  0x96   :  { %224 = vtanh.f32 %v120_v42  ;;  %v131_v44 = vpop.f32.mrf.mxu2 }
  0x97   :  { %v143_v45 = vpop.f32.mrf.mxu3  ;;  %v219_v46 = vpop.eup %218  ;;  %v132_v47 = vadd.f32 %v328_v17, %v131_v44 }
  0x98   :  { %v144_v48 = vadd.f32 %v328_v17, %v143_v45  ;;  %v221_v49 = vpop.eup %220  ;;  %175 = vst.msk [vmem:[%s413_s3 + $0x48] sm:$0xff] %vm165_vm1, %v219_v46 }
  0x99   :  { %179 = vst.msk [vmem:[%s413_s3 + $0x68] sm:$0xff] %vm165_vm1, %v221_v49  ;;  %226 = vtanh.f32 %v132_v47 }
  0x9a   :  { %228 = vtanh.f32 %v144_v48  ;;  %v110_v50 = vpop.f32.mrf.mxu0 }
  0x9b   :  { %v122_v51 = vpop.f32.mrf.mxu1  ;;  %v223_v52 = vpop.eup %222  ;;  %v111_v53 = vadd.f32 %v328_v17, %v110_v50 }
  0x9c   :  { %v123_v54 = vadd.f32 %v328_v17, %v122_v51  ;;  %v225_v55 = vpop.eup %224  ;;  %168 = vst.msk [vmem:[%s413_s3 + $0x10] sm:$0xff] %vm165_vm1, %v223_v52 }
  0x9d   :  { %172 = vst.msk [vmem:[%s413_s3 + $0x30] sm:$0xff] %vm165_vm1, %v225_v55  ;;  %230 = vtanh.f32 %v111_v53 }
  0x9e   :  { %232 = vtanh.f32 %v123_v54  ;;  %v134_v56 = vpop.f32.mrf.mxu2 }
  0x9f   :  { %v146_v57 = vpop.f32.mrf.mxu3  ;;  %v227_v58 = vpop.eup %226  ;;  %v135_v59 = vadd.f32 %v328_v17, %v134_v56 }
  0xa0   :  { %v147_v60 = vadd.f32 %v328_v17, %v146_v57  ;;  %v229_v61 = vpop.eup %228  ;;  %176 = vst.msk [vmem:[%s413_s3 + $0x50] sm:$0xff] %vm165_vm1, %v227_v58 }
  0xa1   :  { %180 = vst.msk [vmem:[%s413_s3 + $0x70] sm:$0xff] %vm165_vm1, %v229_v61  ;;  %234 = vtanh.f32 %v135_v59 }
  0xa2   :  { %236 = vtanh.f32 %v147_v60 }
  0xa3   :  { %v231_v62 = vpop.eup %230 }
  0xa4   :  { %v233_v63 = vpop.eup %232  ;;  %169 = vst.msk [vmem:[%s413_s3 + $0x18] sm:$0xff] %vm165_vm1, %v231_v62 }
  0xa5   :  { %173 = vst.msk [vmem:[%s413_s3 + $0x38] sm:$0xff] %vm165_vm1, %v233_v63 }
  0xa7   :  { %v235_v0 = vpop.eup %234 }
  0xa8   :  { %v237_v1 = vpop.eup %236  ;;  %177 = vst.msk [vmem:[%s413_s3 + $0x58] sm:$0xff] %vm165_vm1, %v235_v0 }
  0xa9   :  { %181 = vst.msk [vmem:[%s413_s3 + $0x78] sm:$0xff] %vm165_vm1, %v237_v1 }

</bundles_post_ra>
